<compile_context>
chip_gen: v7x
topology: tpu7x:2x2x1
jax: 0.10.0
libtpu: 0.0.40
codegen_flags: <defaults>
</compile_context>

<pallas_src>
import functools
import math

import jax
import jax.numpy as jnp
from jax.experimental import pallas as pl
from jax.experimental.pallas import tpu as pltpu

_LANE = 128
_SUBLANE = 8


def _round_up(x, m):
    return ((x + m - 1) // m) * m


def _pick_tile_m(m_pad):
    """Biggest vreg-friendly row tile; prefer >=2 grid steps (v7x 2 TCs)."""
    candidates = (2048, 1024, 512, 256, 128)
    for t in candidates:
        if m_pad % t == 0 and m_pad // t >= 2:
            return t
    for t in candidates:
        if m_pad % t == 0:
            return t
    return m_pad


def _keep_mask(shape, row_off, seed):
    """Bernoulli(0.5) keep-mask from a per-element integer hash.

    Pure jnp/lax integer ops (iota, int32 mul/xor/shift) so it lowers both on
    the Mosaic TPU backend and in interpret mode (unlike pltpu.prng_*).
    Rows are globally indexed (row_off = tile_m * program_id) so tiles get
    decorrelated, non-overlapping streams."""
    r = jax.lax.broadcasted_iota(jnp.int32, shape, 0) + row_off
    c = jax.lax.broadcasted_iota(jnp.int32, shape, 1)
    x = r * jnp.int32(1103515245) + c * jnp.int32(1013904223) + seed
    x = x ^ (x << 13)
    x = x ^ ((x >> 17) & jnp.int32(0x7FFF))   # emulate logical >> 17
    x = x ^ (x << 5)
    x = x * jnp.int32(656739989)
    x = x ^ ((x >> 16) & jnp.int32(0xFFFF))   # emulate logical >> 16
    return x < 0                               # sign bit -> p = 0.5


def _prenet_kernel(*refs, n_layers, training, tile_m, layer_salts):
    """Fused y = dropout(relu(x @ W_l + b_l)) chained over all layers.

    refs layout:
      [seed_ref (SMEM, training only)], x_ref (tile_m, K0_pad) bf16,
      (w_ref_l (K_l_pad, N_l_pad) bf16, b_ref_l (1, N_l_pad) f32) * n_layers,
      o_ref (tile_m, N_last_pad) f32.
    Intermediate activations live in vregs/VMEM only (never written to HBM).
    """
    idx = 0
    if training:
        seed_ref = refs[idx]
        idx += 1
    x_ref = refs[idx]
    idx += 1
    wb_refs = refs[idx: idx + 2 * n_layers]
    o_ref = refs[idx + 2 * n_layers]

    row_off = pl.program_id(0) * tile_m
    y = x_ref[...]                                          # bf16
    for l in range(n_layers):
        w_ref = wb_refs[2 * l]
        b_ref = wb_refs[2 * l + 1]
        acc = jnp.dot(y, w_ref[...], preferred_element_type=jnp.float32)
        acc = acc + b_ref[...]                              # f32 epilogue
        acc = jnp.maximum(acc, 0.0)                         # ReLU
        if training:
            keep = _keep_mask(acc.shape, row_off,
                              seed_ref[0] + layer_salts[l])
            acc = jnp.where(keep, acc + acc, 0.0)           # p=0.5, scale 2.0
        if l + 1 < n_layers:
            y = acc.astype(jnp.bfloat16)                    # next MXU input
        else:
            o_ref[...] = acc.astype(o_ref.dtype)


def prepare_prenet_params(weights, biases):
    """One-time parameter prep (hoisted out of the forward):
    transpose + zero-pad each weight to (K_pad, N_pad) bf16 (out_dim on lanes)
    and each bias to (1, N_pad) f32.  Zero padding is inert through
    matmul + bias + ReLU + dropout."""
    prepped = []
    for w, b in zip(weights, biases):
        out_dim, in_dim = w.shape
        k_pad = _round_up(in_dim, _LANE)
        n_pad = _round_up(out_dim, _LANE)
        w_t = jnp.zeros((k_pad, n_pad), jnp.bfloat16)
        w_t = w_t.at[:in_dim, :out_dim].set(w.astype(jnp.bfloat16).T)
        b_p = jnp.zeros((1, n_pad), jnp.float32)
        b_p = b_p.at[0, :out_dim].set(b.astype(jnp.float32))
        prepped.append((w_t, b_p, in_dim, out_dim))
    return prepped


def prenet_forward(x, prepped_params, *, training=False, seed=0):
    """Prenet.forward.  x: (..., in_dim); prepped_params from
    prepare_prenet_params().  Whole layer stack runs in one pallas_call."""
    lead = x.shape[:-1]
    in_dim = x.shape[-1]
    assert prepped_params and prepped_params[0][2] == in_dim
    m = int(math.prod(lead)) if lead else 1
    x2 = x.reshape(m, in_dim)

    if m >= _LANE:
        m_pad = _round_up(m, _LANE)
    else:
        m_pad = _round_up(m, _SUBLANE)
    tile_m = _pick_tile_m(m_pad)
    gm = m_pad // tile_m

    k0_pad = prepped_params[0][0].shape[0]
    n_last_pad = prepped_params[-1][0].shape[1]
    out_dim_last = prepped_params[-1][3]
    n_layers = len(prepped_params)

    # bf16 activation input (halves HBM read traffic on the mem-bound path).
    x_pad = jnp.zeros((m_pad, k0_pad), jnp.bfloat16)
    x_pad = x_pad.at[:m, :in_dim].set(x2.astype(jnp.bfloat16))

    in_specs, args = [], []
    if training:
        in_specs.append(pl.BlockSpec(memory_space=pltpu.MemorySpace.SMEM))
        args.append(jnp.asarray([seed], dtype=jnp.int32))
    in_specs.append(pl.BlockSpec((tile_m, k0_pad), lambda i: (i, 0)))
    args.append(x_pad)
    for w_t, b_p, _, _ in prepped_params:
        kp, np_ = w_t.shape
        # Full-array blocks, constant block index -> fetched once, VMEM-resident.
        in_specs.append(pl.BlockSpec((kp, np_), lambda i: (0, 0)))
        in_specs.append(pl.BlockSpec((1, np_), lambda i: (0, 0)))
        args.append(w_t)
        args.append(b_p)

    kern = functools.partial(
        _prenet_kernel,
        n_layers=n_layers,
        training=training,
        tile_m=tile_m,
        layer_salts=tuple((l + 1) * 1000003 for l in range(n_layers)),
    )

    out_pad = pl.pallas_call(
        kern,
        out_shape=jax.ShapeDtypeStruct((m_pad, n_last_pad), jnp.float32),
        grid=(gm,),
        in_specs=in_specs,
        out_specs=pl.BlockSpec((tile_m, n_last_pad), lambda i: (i, 0)),
        compiler_params=pltpu.CompilerParams(
            dimension_semantics=("parallel",)),
    )(*args)

    return out_pad[:m, :out_dim_last].reshape(lead + (out_dim_last,))


def init_prenet_params(key, in_dim, sizes):
    """Replicates Prenet.__init__ / LinearNorm init (xavier_uniform, gain=1)."""
    in_sizes = [in_dim] + list(sizes[:-1])
    weights, biases = [], []
    for in_size, out_size in zip(in_sizes, sizes):
        key, kw, kb = jax.random.split(key, 3)
        a = math.sqrt(6.0 / (in_size + out_size))          # xavier_uniform
        w = jax.random.uniform(kw, (out_size, in_size),
                               minval=-a, maxval=a, dtype=jnp.float32)
        bound = 1.0 / math.sqrt(in_size)                   # nn.Linear bias init
        b = jax.random.uniform(kb, (out_size,),
                               minval=-bound, maxval=bound, dtype=jnp.float32)
        weights.append(w)
        biases.append(b)
    return weights, biases


def _prenet_reference_eval(x, weights, biases):
    """Plain-JAX eval-mode reference with matching bf16-input / f32-acc math."""
    y = x.astype(jnp.float32)
    for w, b in zip(weights, biases):
        y = jnp.dot(y.astype(jnp.bfloat16), w.astype(jnp.bfloat16).T,
                    preferred_element_type=jnp.float32)
        y = jnp.maximum(y + b.astype(jnp.float32), 0.0)
    return y


if __name__ == "__main__":
    key = jax.random.PRNGKey(0)
    k_x, k_p = jax.random.split(key)

    B, T, in_dim = 2, 8, 32
    sizes = [64, 32]
    x = jax.random.normal(k_x, (B, T, in_dim), dtype=jnp.float32)
    weights, biases = init_prenet_params(k_p, in_dim, sizes)
    params = prepare_prenet_params(weights, biases)   # one-time prep

    # Eval mode (training=False): dropout is identity -> compare vs reference.
    out = prenet_forward(x, params, training=False)
    out = jax.block_until_ready(out)
    ref = _prenet_reference_eval(x, weights, biases)
    assert out.shape == (B, T, sizes[-1]), out.shape
    max_err = float(jnp.max(jnp.abs(out - ref)))
    assert max_err < 1e-2, max_err

    # Training mode: fused in-kernel dropout (hash-based Bernoulli(0.5), scale
    # 2.0).  RNG stream differs from torch's -> structural checks only.
    out_tr = prenet_forward(x, params, training=True, seed=1234)
    out_tr = jax.block_until_ready(out_tr)
    assert out_tr.shape == (B, T, sizes[-1])
    assert bool(jnp.all(jnp.isfinite(out_tr)))
    assert bool(jnp.any(out_tr != 0.0))

    print("KERNEL_OK")
</pallas_src>

<mosaic_0001>
module attributes {stable_mosaic.version = 11 : i64} {
  func.func @_prenet_kernel(%arg0: i32, %arg1: memref<16x128xbf16, #tpu.memory_space<vmem>>, %arg2: memref<128x128xbf16, #tpu.memory_space<vmem>>, %arg3: memref<1x128xf32, #tpu.memory_space<vmem>>, %arg4: memref<128x128xbf16, #tpu.memory_space<vmem>>, %arg5: memref<1x128xf32, #tpu.memory_space<vmem>>, %arg6: memref<16x128xf32, #tpu.memory_space<vmem>>) attributes {dimension_semantics = [#tpu.dimension_semantics<parallel>], iteration_bounds = array<i64: 1>, scalar_prefetch = 0 : i64, scratch_operands = 0 : i64, tpu.core_type = #tpu.core_type<tc>, window_params = [{transform_indices = @transform_0, window_bounds = array<i64: 16, 128>}, {pipeline_mode = #tpu.pipeline_mode<synchronous>, transform_indices = @transform_1, window_bounds = array<i64: 128, 128>}, {pipeline_mode = #tpu.pipeline_mode<synchronous>, transform_indices = @transform_2, window_bounds = array<i64: 1, 128>}, {pipeline_mode = #tpu.pipeline_mode<synchronous>, transform_indices = @transform_3, window_bounds = array<i64: 128, 128>}, {pipeline_mode = #tpu.pipeline_mode<synchronous>, transform_indices = @transform_4, window_bounds = array<i64: 1, 128>}, {transform_indices = @transform_5, window_bounds = array<i64: 16, 128>}]} {
    %c0 = arith.constant 0 : index
    %c0_0 = arith.constant 0 : index
    %0 = vector.load %arg1[%c0, %c0_0] : memref<16x128xbf16, #tpu.memory_space<vmem>>, vector<16x128xbf16>
    %c0_1 = arith.constant 0 : index
    %c0_2 = arith.constant 0 : index
    %1 = vector.load %arg2[%c0_1, %c0_2] : memref<128x128xbf16, #tpu.memory_space<vmem>>, vector<128x128xbf16>
    %cst = arith.constant dense<0.000000e+00> : vector<16x128xf32>
    %2 = tpu.matmul %0, %1, %cst {dimension_numbers = #tpu.dot_dimension_numbers<[1], [0], [0], [1], [0, 0, 1, 1], [], []>} : vector<16x128xbf16>, vector<128x128xbf16>, vector<16x128xf32> -> vector<16x128xf32>
    %c0_3 = arith.constant 0 : index
    %c0_4 = arith.constant 0 : index
    %3 = vector.load %arg3[%c0_3, %c0_4] : memref<1x128xf32, #tpu.memory_space<vmem>>, vector<1x128xf32>
    %4 = vector.broadcast %3 : vector<1x128xf32> to vector<16x128xf32>
    %5 = arith.addf %2, %4 : vector<16x128xf32>
    %cst_5 = arith.constant 0.000000e+00 : f32
    %6 = vector.broadcast %cst_5 : f32 to vector<16x128xf32>
    %7 = arith.maximumf %5, %6 : vector<16x128xf32>
    %8 = arith.truncf %7 : vector<16x128xf32> to vector<16x128xbf16>
    %c0_6 = arith.constant 0 : index
    %c0_7 = arith.constant 0 : index
    %9 = vector.load %arg4[%c0_6, %c0_7] : memref<128x128xbf16, #tpu.memory_space<vmem>>, vector<128x128xbf16>
    %cst_8 = arith.constant dense<0.000000e+00> : vector<16x128xf32>
    %10 = tpu.matmul %8, %9, %cst_8 {dimension_numbers = #tpu.dot_dimension_numbers<[1], [0], [0], [1], [0, 0, 1, 1], [], []>} : vector<16x128xbf16>, vector<128x128xbf16>, vector<16x128xf32> -> vector<16x128xf32>
    %c0_9 = arith.constant 0 : index
    %c0_10 = arith.constant 0 : index
    %11 = vector.load %arg5[%c0_9, %c0_10] : memref<1x128xf32, #tpu.memory_space<vmem>>, vector<1x128xf32>
    %12 = vector.broadcast %11 : vector<1x128xf32> to vector<16x128xf32>
    %13 = arith.addf %10, %12 : vector<16x128xf32>
    %cst_11 = arith.constant 0.000000e+00 : f32
    %14 = vector.broadcast %cst_11 : f32 to vector<16x128xf32>
    %15 = arith.maximumf %13, %14 : vector<16x128xf32>
    %c0_12 = arith.constant 0 : index
    %c0_13 = arith.constant 0 : index
    %16 = vector.load %arg6[%c0_12, %c0_13] : memref<16x128xf32, #tpu.memory_space<vmem>>, vector<16x128xf32>
    tpu.vector_store %arg6[%c0_12, %c0_13], %15 {strides = array<i32>} : memref<16x128xf32, #tpu.memory_space<vmem>>, vector<16x128xf32>,
    return
  }
  func.func @transform_0(%arg0: i32) -> (i32, i32) {
    %c0_i32 = arith.constant 0 : i32
    %c0_i32_0 = arith.constant 0 : i32
    return %arg0, %c0_i32 : i32, i32
  }
  func.func @transform_1(%arg0: i32) -> (i32, i32) {
    %c0_i32 = arith.constant 0 : i32
    %c0_i32_0 = arith.constant 0 : i32
    %c0_i32_1 = arith.constant 0 : i32
    return %c0_i32, %c0_i32_0 : i32, i32
  }
  func.func @transform_2(%arg0: i32) -> (i32, i32) {
    %c0_i32 = arith.constant 0 : i32
    %c0_i32_0 = arith.constant 0 : i32
    %c0_i32_1 = arith.constant 0 : i32
    return %c0_i32, %c0_i32_0 : i32, i32
  }
  func.func @transform_3(%arg0: i32) -> (i32, i32) {
    %c0_i32 = arith.constant 0 : i32
    %c0_i32_0 = arith.constant 0 : i32
    %c0_i32_1 = arith.constant 0 : i32
    return %c0_i32, %c0_i32_0 : i32, i32
  }
  func.func @transform_4(%arg0: i32) -> (i32, i32) {
    %c0_i32 = arith.constant 0 : i32
    %c0_i32_0 = arith.constant 0 : i32
    %c0_i32_1 = arith.constant 0 : i32
    return %c0_i32, %c0_i32_0 : i32, i32
  }
  func.func @transform_5(%arg0: i32) -> (i32, i32) {
    %c0_i32 = arith.constant 0 : i32
    %c0_i32_0 = arith.constant 0 : i32
    return %arg0, %c0_i32 : i32, i32
  }
}

</mosaic_0001>

<bundles_post_ra>
// kernel: tpu_custom_call.1
= control target key start
LH: loop header
LB: loop body
LE: loop exit
PB: predicated region body
PF: predicated region fallthrough
CT: control target
= control target key end

     0   :  { %10 = vsyncpa [#allocation3], 0  ;;  %s628_s0 = inlined_call_operand.hbm [shape: bf16[16,128], index: 0, kind: input, shape index: {}]   ;;  %s629_s1 = inlined_call_operand.hbm [shape: bf16[128,128], index: 1, kind: input, shape index: {}]   ;;  %s630_s2 = inlined_call_operand.vmem [shape: f32[1,128], index: 2, kind: input, shape index: {}]   ;;  %s631_s3 = inlined_call_operand.hbm [shape: bf16[128,128], index: 3, kind: input, shape index: {}]   ;;  %s632_s4 = inlined_call_operand.vmem [shape: f32[1,128], index: 4, kind: input, shape index: {}]   ;;  %s633_s5 = inlined_call_operand.hbm [shape: f32[16,128], index: 5, kind: output, shape index: {}]  }
   0x1   :  { %11 = vsyncpa [#allocation6], 0 }
   0x2   :  { %12 = vsyncpa [#allocation4], 0  ;;  %s518_s18 = smov [#allocation5]   ;;  %s519_s20 = smov [#allocation2]  }
   0x3   :  { %s30_s19 = sshll.u32 %s518_s18, 4  ;;  %s18_s21 = sshll.u32 %s519_s20, 4  ;;  %s31_s19 = int_to_ptr.vmem [resolvable:$true] %s30_s19  ;;  %s558_s21 = int_to_ptr.vmem [resolvable:$true] %s18_s21 }
   0x4   :  { %s424_s24 = scalar_lea.hbm %s629_s1, 1024 }
   0x5   :  { %p425_p0 = scmp.ne.s32.totalorder %s629_s1, %s424_s24  ;;  %p428_p1 = scmp.lt.u32.totalorder %s424_s24, %s629_s1 }
   0x7   :  { %p430_p2 = pnand %p428_p1, %p425_p0 }
   0x9   :  { %433 = shalt.err (!%p430_p2)
}
   0xa   :  { %s434_s29 = scalar_lea.vmem %s31_s19, 1024  ;;  %p439_p4 = scmp.lt.s32.totalorder %s31_s19, %s31_s19 }
   0xb   :  { %p435_p3 = scmp.ne.s32.totalorder %s31_s19, %s434_s29  ;;  %p440_p5 = scmp.lt.s32.totalorder %s434_s29, %s434_s29 }
   0xd   :  { %p441_p6 = por %p440_p5, %p439_p4 }
   0xf   :  { %p442_p7 = pnand %p441_p6, %p435_p3 }
  0x11   :  { %445 = shalt.err (!%p442_p7)
}
  0x12   :  { %s520_s30 = smov 64   ;;  %s521_s6 = smov 4  }
  0x13   :  { %36 = dma.hbm_to_vmem [thread:$0]  %s629_s1, 1024, %s31_s19, [#allocation6], %s520_s30, %s520_s30, %s521_s6  }
  0x14   :  { %s446_s11 = scalar_lea.hbm %s628_s0, 128 }
  0x15   :  { %p447_p8 = scmp.ne.s32.totalorder %s628_s0, %s446_s11  ;;  %p450_p9 = scmp.lt.u32.totalorder %s446_s11, %s628_s0 }
  0x17   :  { %p452_p10 = pnand %p450_p9, %p447_p8 }
  0x19   :  { %455 = shalt.err (!%p452_p10)
}
  0x1a   :  { %s456_s16 = scalar_lea.vmem %s558_s21, 128  ;;  %p461_p12 = scmp.lt.s32.totalorder %s558_s21, %s558_s21 }
  0x1b   :  { %p457_p11 = scmp.ne.s32.totalorder %s558_s21, %s456_s16  ;;  %p462_p13 = scmp.lt.s32.totalorder %s456_s16, %s456_s16 }
  0x1d   :  { %p463_p0 = por %p462_p13, %p461_p12 }
  0x1f   :  { %p464_p1 = pnand %p463_p0, %p457_p11 }
  0x21   :  { %467 = shalt.err (!%p464_p1)
}
  0x22   :  { %24 = dma.hbm_to_vmem [thread:$0]  %s628_s0, 128, %s558_s21, [#allocation3], %s520_s30, %s520_s30, %s521_s6  }
  0x23   :  { %s522_s18 = smov [#allocation7]   ;;  %s468_s23 = scalar_lea.hbm %s631_s3, 1024 }
  0x24   :  { %s44_s19 = sshll.u32 %s522_s18, 4  ;;  %p469_p2 = scmp.ne.s32.totalorder %s631_s3, %s468_s23  ;;  %s45_s19 = int_to_ptr.vmem [resolvable:$true] %s44_s19 }
  0x25   :  { %p472_p3 = scmp.lt.u32.totalorder %s468_s23, %s631_s3 }
  0x27   :  { %p474_p4 = pnand %p472_p3, %p469_p2 }
  0x29   :  { %477 = shalt.err (!%p474_p4)
}
  0x2a   :  { %s478_s28 = scalar_lea.vmem %s45_s19, 1024  ;;  %p483_p6 = scmp.lt.s32.totalorder %s45_s19, %s45_s19 }
  0x2b   :  { %p479_p5 = scmp.ne.s32.totalorder %s45_s19, %s478_s28  ;;  %p484_p7 = scmp.lt.s32.totalorder %s478_s28, %s478_s28 }
  0x2d   :  { %p485_p8 = por %p484_p7, %p483_p6 }
  0x2f   :  { %p486_p9 = pnand %p485_p8, %p479_p5 }
  0x31   :  { %489 = shalt.err (!%p486_p9)
}
  0x32   :  { %50 = dma.hbm_to_vmem [thread:$0]  %s631_s3, 1024, %s45_s19, [#allocation6], %s520_s30, %s520_s30, %s521_s6  }
  0x33   :  { %512 = dma.done.wait [#allocation3], 128  }
  0x34   :  { %513 = vsyncadd [#allocation3], 4294967168 }
  0x35   :  { %514 = dma.done.wait [#allocation6], 2048  }
  0x36   :  { %515 = vsyncadd [#allocation6], 4294965248  ;;  %v523_v0 = vmov 0.0   ;;  %vm524_vm0 = vmmov 0   ;;  %v407_v1 = vld [vmem:[#allocation5] sm:$0xff]   ;;  %v408_v2 = vld [vmem:[#allocation5 + $0x8] sm:$0xff]  }
  0x37   :  { %357 = vmatprep.subr.bf16.mxu0 %v523_v0  ;;  %373 = vmatprep.mubr.msk.bf16.mxu0 %vm524_vm0, %v523_v0  ;;  %v409_v3 = vld [vmem:[#allocation5 + $0x10] sm:$0xff]   ;;  %v416_v4 = vld [vmem:[#allocation7] sm:$0xff]   ;;  %v410_v5 = vld [vmem:[#allocation5 + $0x18] sm:$0xff]   ;;  %s525_s7 = smov [#allocation8]  }
  0x38   :  { %377 = vmatprep.subr.bf16.mxu1 %v523_v0  ;;  %393 = vmatprep.mubr.msk.bf16.mxu1 %vm524_vm0, %v523_v0  ;;  %v417_v6 = vld [vmem:[#allocation7 + $0x8] sm:$0xff]   ;;  %v411_v7 = vld [vmem:[#allocation5 + $0x20] sm:$0xff]   ;;  %v418_v8 = vld [vmem:[#allocation7 + $0x10] sm:$0xff]   ;;  %s307_s8 = sshll.u32 %s525_s7, 4  ;;  %s308_s8 = int_to_ptr.vmem [resolvable:$true] %s307_s8 }
  0x39   :  { %358 = vmatpush3.bf16.msra.mxu0 %v407_v1  ;;  %378 = vmatpush3.bf16.msra.mxu1 %v416_v4  ;;  %v412_v9 = vld [vmem:[#allocation5 + $0x28] sm:$0xff]   ;;  %v419_v10 = vld [vmem:[#allocation7 + $0x18] sm:$0xff]   ;;  %v413_v11 = vld [vmem:[#allocation5 + $0x30] sm:$0xff]   ;;  %p495_p11 = scmp.lt.s32.totalorder %s308_s8, %s308_s8 }
  0x3a   :  { %359 = vmatprep.subr.bf16.mxu0 %v523_v0  ;;  %379 = vmatprep.subr.bf16.mxu1 %v523_v0  ;;  %v420_v12 = vld [vmem:[#allocation7 + $0x20] sm:$0xff]   ;;  %v414_v13 = vld [vmem:[#allocation5 + $0x38] sm:$0xff]   ;;  %v421_v14 = vld [vmem:[#allocation7 + $0x28] sm:$0xff]  }
  0x3b   :  { %v415_v15 = vld [vmem:[#allocation2] sm:$0xff]   ;;  %v422_v16 = vld [vmem:[#allocation7 + $0x30] sm:$0xff]  }
  0x3c   :  { %v423_v17 = vld [vmem:[#allocation7 + $0x38] sm:$0xff]  }
  0x3d   :  { %360 = vmatpush3.bf16.msra.mxu0 %v408_v2  ;;  %380 = vmatpush3.bf16.msra.mxu1 %v417_v6  ;;  %v320_v18 = vld [vmem:[%s630_s2] ss:$0 sm:$0xff]  ;;  %s490_s2 = scalar_lea.vmem %s308_s8, 256 }
  0x3e   :  { %361 = vmatprep.subr.bf16.mxu0 %v523_v0  ;;  %381 = vmatprep.subr.bf16.mxu1 %v523_v0  ;;  %v330_v28 = vld [vmem:[%s632_s4] ss:$0 sm:$0xff]  ;;  %p491_p10 = scmp.ne.s32.totalorder %s308_s8, %s490_s2  ;;  %p496_p12 = scmp.lt.s32.totalorder %s490_s2, %s490_s2 }
  0x40   :  { %p497_p13 = por %p496_p12, %p495_p11 }
  0x41   :  { %362 = vmatpush3.bf16.msra.mxu0 %v409_v3  ;;  %382 = vmatpush3.bf16.msra.mxu1 %v418_v8 }
  0x42   :  { %363 = vmatprep.subr.bf16.mxu0 %v523_v0  ;;  %383 = vmatprep.subr.bf16.mxu1 %v523_v0  ;;  %p498_p0 = pnand %p497_p13, %p491_p10 }
  0x45   :  { %364 = vmatpush3.bf16.msra.mxu0 %v410_v5  ;;  %384 = vmatpush3.bf16.msra.mxu1 %v419_v10 }
  0x46   :  { %365 = vmatprep.subr.bf16.mxu0 %v523_v0  ;;  %385 = vmatprep.subr.bf16.mxu1 %v523_v0 }
  0x49   :  { %366 = vmatpush3.bf16.msra.mxu0 %v411_v7  ;;  %386 = vmatpush3.bf16.msra.mxu1 %v420_v12 }
  0x4a   :  { %367 = vmatprep.subr.bf16.mxu0 %v523_v0  ;;  %387 = vmatprep.subr.bf16.mxu1 %v523_v0 }
  0x4d   :  { %368 = vmatpush3.bf16.msra.mxu0 %v412_v9  ;;  %388 = vmatpush3.bf16.msra.mxu1 %v421_v14 }
  0x4e   :  { %369 = vmatprep.subr.bf16.mxu0 %v523_v0  ;;  %389 = vmatprep.subr.bf16.mxu1 %v523_v0 }
  0x51   :  { %370 = vmatpush3.bf16.msra.mxu0 %v413_v11  ;;  %390 = vmatpush3.bf16.msra.mxu1 %v422_v16 }
  0x52   :  { %371 = vmatprep.subr.bf16.mxu0 %v523_v0  ;;  %391 = vmatprep.subr.bf16.mxu1 %v523_v0 }
  0x55   :  { %372 = vmatpush3.bf16.msra.mxu0 %v414_v13  ;;  %392 = vmatpush3.bf16.msra.mxu1 %v423_v17 }
  0x58   :  { %374 = vmatmul.mubr.bf16.vlgmr.msra.gmra.mrb[0].mxu0 %v415_v15 }
 0x12b   :  { %v176_v19 = vpop.f32.mrb[0].mxu0 }
 0x12c   :  { %v177_v20 = vadd.f32 %v320_v18, %v176_v19  ;;  %v375_v21 = vpop.f32.mrb[1].mxu0 }
 0x12d   :  { %v179_v22 = vpop.f32.mrb[2].mxu0 }
 0x12e   :  { %v180_v23 = vadd.f32 %v320_v18, %v179_v22  ;;  %v376_v24 = vpop.f32.mrb[3].mxu0  ;;  %v183_v25 = vmax.f32 %v177_v20, 0.0 }
 0x130   :  { %v184_v26 = vmax.f32 %v180_v23, 0.0 }
 0x132   :  { %v185_v27 = vpack.c.bf16 %v184_v26, %v183_v25 }
 0x134   :  { %394 = vmatmul.mubr.bf16.vlgmr.msra.gmra.mrb[0].mxu1 %v185_v27 }
 0x207   :  { %v291_v29 = vpop.f32.mrb[0].mxu1 }
 0x208   :  { %v292_v30 = vadd.f32 %v330_v28, %v291_v29  ;;  %v395_v31 = vpop.f32.mrb[1].mxu1 }
 0x209   :  { %v294_v32 = vpop.f32.mrb[2].mxu1 }
 0x20a   :  { %v298_v33 = vmax.f32 %v292_v30, 0.0  ;;  %v295_v34 = vadd.f32 %v330_v28, %v294_v32  ;;  %v396_v35 = vpop.f32.mrb[3].mxu1 }
 0x20c   :  { %300 = vst [vmem:[#allocation8] sm:$0xff] %v298_v33  ;;  %v299_v36 = vmax.f32 %v295_v34, 0.0 }
 0x20e   :  { %301 = vst [vmem:[#allocation8 + $0x8] sm:$0xff] %v299_v36 }
 0x20f   :  { %501 = shalt.err (!%p498_p0)
}
 0x210   :  { %s502_s10 = scalar_lea.hbm %s633_s5, 256 }
 0x211   :  { %p503_p1 = scmp.ne.s32.totalorder %s633_s5, %s502_s10  ;;  %p506_p2 = scmp.lt.u32.totalorder %s502_s10, %s633_s5 }
 0x213   :  { %p508_p3 = pnand %p506_p2, %p503_p1 }
 0x215   :  { %511 = shalt.err (!%p508_p3)
}
 0x216   :  { %s526_s15 = smov 128   ;;  %s527_s16 = smov 8  }
 0x217   :  { %313 = dma.vmem_to_hbm [thread:$0]  %s308_s8, 256, %s633_s5, [#allocation4], %s526_s15, %s526_s15, %s527_s16  }
 0x218   :  { %516 = dma.done.wait [#allocation4], 256  }
 0x219   :  { %517 = vsyncadd [#allocation4], 4294967040 }
 0x21a   :  { %317 = vsyncpa [#allocation3], 1 }
 0x21b   :  { %318 = vsyncpa [#allocation6], 1 }
 0x21c   :  { %319 = vsyncpa [#allocation4], 1 }

</bundles_post_ra>
